<compile_context>
chip_gen: v6e
topology: v6e:2x2x1
jax: 0.10.0
libtpu: 0.0.40
codegen_flags: <defaults>
</compile_context>

<pallas_src>
import functools

import jax
import jax.numpy as jnp
from jax.experimental import pallas as pl
from jax.experimental.pallas import tpu as pltpu

_LEAKY_SLOPE = 0.2
_BN_EPS = 1e-5


def _lrelu(x):
    # slope < 1  =>  max(x, slope*x) == LeakyReLU(x); cmp-free on the VPU.
    return jnp.maximum(x, _LEAKY_SLOPE * x)


def _round_up(x, m):
    return (x + m - 1) // m * m


def _vmem_limit_bytes():
    """Explicit, conservative scoped-VMEM limit (v7x has only 64 MiB physical)."""
    try:
        cap = pltpu.get_tpu_info().vmem_capacity_bytes
    except Exception:
        cap = 64 * 1024 * 1024          # assume the tightest generation (v7x)
    return int(min(cap // 2, 64 * 1024 * 1024))


# ----------------------------------------------------------------------------
# Stage 1: relation MLP (batched over k) + IN-KERNEL neighbor gather/weighted
# sum (one-hot adjacency matmul) + Linear(dim, dim).  Also emits per-tile
# (sum, sum_sq) of y for the global BatchNorm statistics.
# ----------------------------------------------------------------------------
def _stage1_kernel(idx_ref, vf_ref, f_ref, wr_ref, br_ref, wt_ref,
                   y_ref, stats_ref):
    """Per grid step (tb batch items, N = n_views, rl = padded relation lanes):
      idx_ref  : [tb, N, k]   int32  KNN indices (local to the batch item)
      vf_ref   : [tb, N, rl]  f32    relation features, lanes [0, k*10) used
      f_ref    : [tb, N, dim] bf16   view features (read ONCE, not k-duplicated)
      wr_ref   : [3, rl, rl]  f32    block-diagonal relation-MLP weights (padded)
      br_ref   : [3, rl]      f32    tiled relation-MLP biases (padded)
      wt_ref   : [dim, dim]   bf16   Linear weight, pre-transposed (y = x @ Wt)
      y_ref    : [tb, N, dim] bf16   pre-BN activations
      stats_ref: [1, 2, dim]  f32    per-tile (sum, sum_sq) of y
    """
    f32 = jnp.float32
    tb, n, k = idx_ref.shape
    dim = f_ref.shape[2]
    rl = vf_ref.shape[2]
    t = tb * n

    # ---- relation MLP over all k neighbors at once (block-diag, full-lane) ----
    vf = vf_ref[...].reshape(t, rl)
    h = _lrelu(jnp.dot(vf, wr_ref[0], preferred_element_type=f32) + br_ref[0:1, :])
    h = _lrelu(jnp.dot(h, wr_ref[1], preferred_element_type=f32) + br_ref[1:2, :])
    s = jnp.dot(h, wr_ref[2], preferred_element_type=f32) + br_ref[2:3, :]
    s = s.reshape(tb, n, rl)          # per-neighbor scores live in lanes 0..k-1

    # ---- in-kernel neighbor gather + weighted sum:  build the tiny weighted
    # adjacency  W[b, n, m] = sum_k s_k * [idx_k == m]  and run it on the MXU
    # as a batched matmul against the (non-duplicated) F block. ----
    idx = idx_ref[...]
    iota_m = jax.lax.broadcasted_iota(jnp.int32, (tb, n, n), 2)
    w = jnp.zeros((tb, n, n), f32)
    for kk in range(k):                                    # k is small & static
        w = w + jnp.where(idx[:, :, kk:kk + 1] == iota_m,
                          s[:, :, kk:kk + 1], 0.0)
    gathered = jnp.einsum("bnm,bmd->bnd", w.astype(jnp.bfloat16), f_ref[...],
                          preferred_element_type=f32)      # [tb, n, dim] f32

    # ---- Linear(dim, dim) in bf16 on the MXU.  The Linear bias is dropped on
    # purpose: training-mode BatchNorm subtracts the batch mean, which cancels
    # any constant per-column bias exactly (and keeps padded rows exactly 0).
    y = jnp.dot(gathered.reshape(t, dim).astype(jnp.bfloat16), wt_ref[...],
                preferred_element_type=f32)                # [t, dim] f32

    y_ref[...] = y.reshape(tb, n, dim).astype(y_ref.dtype)
    # Two plain row stores (no in-kernel concatenate / relayout in the epilogue).
    stats_ref[:, 0:1, :] = jnp.sum(y, axis=0, keepdims=True)[None]
    stats_ref[:, 1:2, :] = jnp.sum(y * y, axis=0, keepdims=True)[None]


# ----------------------------------------------------------------------------
# Stage 2: folded BatchNorm affine (scale/shift precomputed) + LeakyReLU.
# ----------------------------------------------------------------------------
def _stage2_kernel(y_ref, ab_ref, out_ref):
    ab = ab_ref[...]                                       # [2, dim] f32
    z = y_ref[...].astype(jnp.float32) * ab[0:1, :] + ab[1:2, :]
    out_ref[...] = _lrelu(z).astype(out_ref.dtype)


# ----------------------------------------------------------------------------
# Parameter packing (call ONCE, outside the per-forward path).
# ----------------------------------------------------------------------------
def pack_params(params, k):
    """Block-diagonal relation-MLP weights (kron), zero-padded to a 128-lane
    multiple, bf16 Linear weight, stacked BN affine."""
    rl = _round_up(k * 10, 128)
    eye = jnp.eye(k, dtype=jnp.float32)

    def pad_w(w):
        r, c = w.shape
        return jnp.pad(w, ((0, rl - r), (0, rl - c)))

    def pad_b(b):
        return jnp.pad(b, ((0, rl - b.shape[0]),))

    wr = jnp.stack([pad_w(jnp.kron(eye, params["w1"])),
                    pad_w(jnp.kron(eye, params["w2"])),
                    pad_w(jnp.kron(eye, params["w3"]))], axis=0)    # [3, rl, rl]
    br = jnp.stack([pad_b(jnp.tile(params["b1"][0], k)),
                    pad_b(jnp.tile(params["b2"][0], k)),
                    pad_b(jnp.tile(params["b3"][0], k))], axis=0)   # [3, rl]
    return {
        "wr": wr,
        "br": br,
        "wt": params["Wt"].astype(jnp.bfloat16),            # y = x @ Wt (pre-T)
        "bn": jnp.stack([params["gamma"][0], params["beta"][0]], axis=0),
    }


# ----------------------------------------------------------------------------
# Tile derivation from a VMEM budget.
# ----------------------------------------------------------------------------
def _derive_stage1_tile_b(B, N, dim, k, rl, vmem_limit):
    # Per-row bytes: double-buffered blocks (vF f32, idx, F bf16, y bf16) plus
    # in-kernel f32 intermediates (gathered / y / relation-MLP activations).
    per_row = 2 * (rl * 4 + k * 4 + 2 * dim + 2 * dim) + 12 * dim + 3 * rl * 4
    weights = 2 * (3 * rl * rl * 4 + 3 * rl * 4 + dim * dim * 2)
    budget = max(vmem_limit - weights - (4 << 20), 1 << 20)
    max_rows = max(budget // per_row, N)
    target_rows = min(1024, max_rows)        # 512-1024 rows ~ HBM roofline knee
    tile_b = max(1, min(B, target_rows // max(N, 1)))
    if B >= 2:
        # Keep >= 2 grid tiles so both v7x TensorCores receive work under
        # dimension_semantics=("parallel",).
        tile_b = min(tile_b, (B + 1) // 2)
    return tile_b


def _pick_stage2_rows(total_rows, unit_rows, dim, out_bytes, budget):
    """Largest row tile that (a) is a multiple of the stage-1 row unit so it
    divides total_rows exactly, (b) keeps clean (8,128) tiling, (c) fits the
    VMEM budget.  Stage 2 is purely mem-bound, so bigger is better."""
    n_units = max(total_rows // unit_rows, 1)
    per_row = 2 * dim * (2 + out_bytes) + 4 * dim
    best = unit_rows
    for q in range(1, n_units + 1):
        if n_units % q:
            continue
        rows = q * unit_rows
        if rows > 8192 or rows * per_row > budget:
            continue
        if rows % 8 and rows != total_rows:
            continue
        best = max(best, rows)
    if best % 8 and best != total_rows:
        best = total_rows
    return best


# ----------------------------------------------------------------------------
# Full forward.
# ----------------------------------------------------------------------------
def local_gcn_forward(F, V, packed, *, k):
    """LocalGCN_raw forward.  F: [B, N, dim], V: [B, N, 3].  `packed` comes from
    pack_params (built once, outside this call)."""
    B, N, dim = F.shape
    M = B * N
    rl = packed["wr"].shape[1]
    out_dtype = F.dtype
    out_bytes = jnp.dtype(out_dtype).itemsize

    # ---------------- glue (cheap indexing / tiny tensors only) ----------------
    # KNN over the N views of every batch item; indices are LOCAL (0..N-1).
    # TODO(synk): top_k tie-breaking may differ from torch.topk(largest=False).
    dist = -2.0 * jnp.einsum("bnc,bmc->bnm", V, V)
    sq = jnp.sum(V * V, axis=-1)
    dist = dist + sq[:, :, None] + sq[:, None, :]
    _, idx = jax.lax.top_k(-jnp.swapaxes(dist, 1, 2), k)       # [B, N, k]
    idx = idx.astype(jnp.int32)

    # Relation features from the tiny vertex tensor, padded to a full 128-lane
    # multiple so the in-kernel MLP runs unmasked full-lane.
    b_ix = jnp.arange(B)[:, None, None]
    vg = V[b_ix, idx]                                          # [B, N, k, 3]
    v0 = jnp.broadcast_to(vg[:, :, 0:1, :], vg.shape)
    diff = v0 - vg
    nrm = jnp.sqrt(jnp.sum(diff * diff, axis=-1, keepdims=True))
    vF = jnp.concatenate([v0, vg, diff, nrm], axis=-1)         # [B, N, k, 10]
    vF = jnp.pad(vF.reshape(B, N, k * 10).astype(jnp.float32),
                 ((0, 0), (0, 0), (0, rl - k * 10)))           # [B, N, rl]

    # Feature stream in bf16 (halves the dominant HBM read; precision already
    # bounded by the bf16 MXU matmuls).  No k-duplicated Fg slab is built:
    # the gather happens inside the kernel.
    Fb = F.astype(jnp.bfloat16)

    # -------------------------- tiling / padding -------------------------------
    vmem_limit = _vmem_limit_bytes()
    tile_b = _derive_stage1_tile_b(B, N, dim, k, rl, vmem_limit)
    Bp = _round_up(B, tile_b)
    nbt = Bp // tile_b
    if Bp != B:
        # Padded items have F == 0, so y == 0 exactly (no Linear bias) and they
        # contribute nothing to the BN batch statistics (we divide by true M).
        pad = ((0, Bp - B), (0, 0), (0, 0))
        Fb = jnp.pad(Fb, pad)
        vF = jnp.pad(vF, pad)
        idx = jnp.pad(idx, pad)

    # TODO(synk): on v7x, drive the two TensorCores explicitly via core_map /
    # CORE_PARALLEL instead of relying on the "parallel" tag + >=2 tiles.
    cparams = pltpu.CompilerParams(dimension_semantics=("parallel",),
                                   vmem_limit_bytes=vmem_limit)

    # ---- stage 1: relation MLP + in-kernel gather + Linear (+ per-tile stats) -
    y, stats = pl.pallas_call(
        _stage1_kernel,
        out_shape=(jax.ShapeDtypeStruct((Bp, N, dim), jnp.bfloat16),
                   jax.ShapeDtypeStruct((nbt, 2, dim), jnp.float32)),
        grid=(nbt,),
        in_specs=[
            pl.BlockSpec((tile_b, N, k), lambda i: (i, 0, 0)),
            pl.BlockSpec((tile_b, N, rl), lambda i: (i, 0, 0)),
            pl.BlockSpec((tile_b, N, dim), lambda i: (i, 0, 0)),
            pl.BlockSpec((3, rl, rl), lambda i: (0, 0, 0)),
            pl.BlockSpec((3, rl), lambda i: (0, 0)),
            pl.BlockSpec((dim, dim), lambda i: (0, 0)),
        ],
        out_specs=(pl.BlockSpec((tile_b, N, dim), lambda i: (i, 0, 0)),
                   pl.BlockSpec((1, 2, dim), lambda i: (i, 0, 0))),
        compiler_params=cparams,
    )(idx, vF, Fb, packed["wr"], packed["br"], packed["wt"])

    # ---- glue: fold per-tile stats into one BN scale/shift (training mode) ----
    # TODO(synk): eval-mode (running-stats) BatchNorm would need the Linear bias
    # added back; only training-mode batch statistics are modelled here.
    sums = jnp.sum(stats, axis=0)                              # [2, dim]
    mu = sums[0] / M
    var = jnp.maximum(sums[1] / M - mu * mu, 0.0)              # clamp: f32 cancel
    scale = packed["bn"][0] * jax.lax.rsqrt(var + _BN_EPS)
    shift = packed["bn"][1] - mu * scale
    ab = jnp.stack([scale, shift], axis=0)                     # [2, dim] f32

    # ---------------- stage 2: folded BatchNorm + LeakyReLU --------------------
    rows = Bp * N
    tile_m2 = _pick_stage2_rows(rows, tile_b * N, dim, out_bytes,
                                max(vmem_limit - (1 << 20), 1 << 20))
    out = pl.pallas_call(
        _stage2_kernel,
        out_shape=jax.ShapeDtypeStruct((rows, dim), out_dtype),
        grid=(rows // tile_m2,),
        in_specs=[pl.BlockSpec((tile_m2, dim), lambda i: (i, 0)),
                  pl.BlockSpec((2, dim), lambda i: (0, 0))],
        out_specs=pl.BlockSpec((tile_m2, dim), lambda i: (i, 0)),
        compiler_params=cparams,
    )(y.reshape(rows, dim), ab)

    return out[:M].reshape(B, N, dim)


# ----------------------------------------------------------------------------
# Pure-JAX f32 reference (faithful to the PyTorch module, incl. Linear bias).
# ----------------------------------------------------------------------------
def reference_forward(F, V, params, *, k):
    B, N, dim = F.shape
    dist = -2.0 * jnp.einsum("bnc,bmc->bnm", V, V)
    sq = jnp.sum(V * V, axis=-1)
    dist = dist + sq[:, :, None] + sq[:, None, :]
    _, idx = jax.lax.top_k(-jnp.swapaxes(dist, 1, 2), k)
    b_idx = jnp.arange(B)[:, None, None]
    Fg = F[b_idx, idx]
    vg = V[b_idx, idx]
    v0 = jnp.broadcast_to(vg[:, :, 0:1, :], vg.shape)
    diff = v0 - vg
    nrm = jnp.sqrt(jnp.sum(diff * diff, axis=-1, keepdims=True))
    vF = jnp.concatenate([v0, vg, diff, nrm], axis=-1)
    h = _lrelu(vF @ params["w1"] + params["b1"][0])
    h = _lrelu(h @ params["w2"] + params["b2"][0])
    s = h @ params["w3"] + params["b3"][0]
    x = jnp.sum(s * Fg, axis=-2).reshape(-1, dim)
    y = x @ params["Wt"] + params["bL"][0]
    mu = jnp.mean(y, axis=0, keepdims=True)
    var = jnp.mean((y - mu) ** 2, axis=0, keepdims=True)
    y = (y - mu) * jax.lax.rsqrt(var + _BN_EPS) * params["gamma"][0] + params["beta"][0]
    return _lrelu(y).reshape(B, N, dim)


def make_params(key, dim):
    ks = jax.random.split(key, 8)
    return {
        # relation MLP R: Linear(10,10) -> Linear(10,10) -> Linear(10,1)
        "w1": jax.random.normal(ks[0], (10, 10), jnp.float32) * 0.3,
        "b1": jax.random.normal(ks[1], (1, 10), jnp.float32) * 0.1,
        "w2": jax.random.normal(ks[2], (10, 10), jnp.float32) * 0.3,
        "b2": jax.random.normal(ks[3], (1, 10), jnp.float32) * 0.1,
        "w3": jax.random.normal(ks[4], (10, 1), jnp.float32) * 0.3,
        "b3": jnp.zeros((1, 1), jnp.float32),
        # "conv": Linear(dim, dim) stored pre-transposed (W^T), + BN affine.
        "Wt": jax.random.normal(ks[5], (dim, dim), jnp.float32) * (1.0 / jnp.sqrt(dim)),
        "bL": jax.random.normal(ks[6], (1, dim), jnp.float32) * 0.05,
        "gamma": 1.0 + 0.1 * jax.random.normal(ks[7], (1, dim), jnp.float32),
        "beta": jnp.zeros((1, dim), jnp.float32),
    }


if __name__ == "__main__":
    B, n_views, dim, k = 2, 16, 128, 4

    key = jax.random.PRNGKey(0)
    kF, kV, kP = jax.random.split(key, 3)
    F = jax.random.normal(kF, (B, n_views, dim), jnp.float32)
    V = jax.random.normal(kV, (B, n_views, 3), jnp.float32)
    params = make_params(kP, dim)

    packed = pack_params(params, k)                 # hoisted: built exactly once
    fwd = jax.jit(functools.partial(local_gcn_forward, k=k))
    out = jax.block_until_ready(fwd(F, V, packed))

    ref = reference_forward(F, V, params, k=k)
    assert out.shape == (B, n_views, dim)
    assert bool(jnp.all(jnp.isfinite(out)))
    # bf16 feature / weight streams on the MXU vs a pure-f32 reference: compare
    # with a bf16-appropriate tolerance (documented precision trade-off).
    assert bool(jnp.allclose(out, ref, rtol=5e-2, atol=5e-2)), "kernel/reference mismatch"

    print("KERNEL_OK")
</pallas_src>

<mosaic_0001>
module attributes {stable_mosaic.version = 11 : i64} {
  func.func @_stage2_kernel(%arg0: i32, %arg1: memref<32x128xbf16, #tpu.memory_space<vmem>>, %arg2: memref<2x128xf32, #tpu.memory_space<vmem>>, %arg3: memref<32x128xf32, #tpu.memory_space<vmem>>) attributes {dimension_semantics = [#tpu.dimension_semantics<parallel>], iteration_bounds = array<i64: 1>, scalar_prefetch = 0 : i64, scratch_operands = 0 : i64, tpu.core_type = #tpu.core_type<tc>, window_params = [{transform_indices = @transform_0, window_bounds = array<i64: 32, 128>}, {pipeline_mode = #tpu.pipeline_mode<synchronous>, transform_indices = @transform_1, window_bounds = array<i64: 2, 128>}, {transform_indices = @transform_2, window_bounds = array<i64: 32, 128>}]} {
    %c0 = arith.constant 0 : index
    %c0_0 = arith.constant 0 : index
    %0 = vector.load %arg2[%c0, %c0_0] : memref<2x128xf32, #tpu.memory_space<vmem>>, vector<2x128xf32>
    %c0_1 = arith.constant 0 : index
    %c0_2 = arith.constant 0 : index
    %1 = vector.load %arg1[%c0_1, %c0_2] : memref<32x128xbf16, #tpu.memory_space<vmem>>, vector<32x128xbf16>
    %2 = arith.extf %1 : vector<32x128xbf16> to vector<32x128xf32>
    %3 = vector.extract_strided_slice %0 {offsets = [0, 0], sizes = [1, 128], strides = [1, 1]} : vector<2x128xf32> to vector<1x128xf32>
    %4 = vector.broadcast %3 : vector<1x128xf32> to vector<32x128xf32>
    %5 = arith.mulf %2, %4 : vector<32x128xf32>
    %6 = vector.extract_strided_slice %0 {offsets = [1, 0], sizes = [1, 128], strides = [1, 1]} : vector<2x128xf32> to vector<1x128xf32>
    %7 = vector.broadcast %6 : vector<1x128xf32> to vector<32x128xf32>
    %8 = arith.addf %5, %7 : vector<32x128xf32>
    %cst = arith.constant 2.000000e-01 : f32
    %9 = vector.broadcast %cst : f32 to vector<32x128xf32>
    %10 = arith.mulf %9, %8 : vector<32x128xf32>
    %11 = arith.maximumf %8, %10 : vector<32x128xf32>
    %c0_3 = arith.constant 0 : index
    %c0_4 = arith.constant 0 : index
    %12 = vector.load %arg3[%c0_3, %c0_4] : memref<32x128xf32, #tpu.memory_space<vmem>>, vector<32x128xf32>
    tpu.vector_store %arg3[%c0_3, %c0_4], %11 {strides = array<i32>} : memref<32x128xf32, #tpu.memory_space<vmem>>, vector<32x128xf32>,
    return
  }
  func.func @transform_0(%arg0: i32) -> (i32, i32) {
    %c0_i32 = arith.constant 0 : i32
    %c0_i32_0 = arith.constant 0 : i32
    return %arg0, %c0_i32 : i32, i32
  }
  func.func @transform_1(%arg0: i32) -> (i32, i32) {
    %c0_i32 = arith.constant 0 : i32
    %c0_i32_0 = arith.constant 0 : i32
    %c0_i32_1 = arith.constant 0 : i32
    return %c0_i32, %c0_i32_0 : i32, i32
  }
  func.func @transform_2(%arg0: i32) -> (i32, i32) {
    %c0_i32 = arith.constant 0 : i32
    %c0_i32_0 = arith.constant 0 : i32
    return %arg0, %c0_i32 : i32, i32
  }
}

module attributes {stable_mosaic.version = 11 : i64} {
  func.func @_stage1_kernel(%arg0: i32, %arg1: memref<1x16x4xi32, #tpu.memory_space<vmem>>, %arg2: memref<1x16x128xf32, #tpu.memory_space<vmem>>, %arg3: memref<1x16x128xbf16, #tpu.memory_space<vmem>>, %arg4: memref<3x128x128xf32, #tpu.memory_space<vmem>>, %arg5: memref<3x128xf32, #tpu.memory_space<vmem>>, %arg6: memref<128x128xbf16, #tpu.memory_space<vmem>>, %arg7: memref<1x16x128xbf16, #tpu.memory_space<vmem>>, %arg8: memref<1x2x128xf32, #tpu.memory_space<vmem>>) attributes {dimension_semantics = [#tpu.dimension_semantics<parallel>], iteration_bounds = array<i64: 2>, scalar_prefetch = 0 : i64, scratch_operands = 0 : i64, tpu.core_type = #tpu.core_type<tc>, window_params = [{transform_indices = @transform_0, window_bounds = array<i64: 1, 16, 4>}, {transform_indices = @transform_1, window_bounds = array<i64: 1, 16, 128>}, {transform_indices = @transform_2, window_bounds = array<i64: 1, 16, 128>}, {pipeline_mode = #tpu.pipeline_mode<synchronous>, transform_indices = @transform_3, window_bounds = array<i64: 3, 128, 128>}, {pipeline_mode = #tpu.pipeline_mode<synchronous>, transform_indices = @transform_4, window_bounds = array<i64: 3, 128>}, {pipeline_mode = #tpu.pipeline_mode<synchronous>, transform_indices = @transform_5, window_bounds = array<i64: 128, 128>}, {transform_indices = @transform_6, window_bounds = array<i64: 1, 16, 128>}, {transform_indices = @transform_7, window_bounds = array<i64: 1, 2, 128>}]} {
    %c0 = arith.constant 0 : index
    %c0_0 = arith.constant 0 : index
    %c0_1 = arith.constant 0 : index
    %0 = vector.load %arg2[%c0, %c0_0, %c0_1] : memref<1x16x128xf32, #tpu.memory_space<vmem>>, vector<1x16x128xf32>
    %1 = vector.shape_cast %0 : vector<1x16x128xf32> to vector<16x128xf32>
    %c0_2 = arith.constant 0 : index
    %c0_3 = arith.constant 0 : index
    %c0_4 = arith.constant 0 : index
    %2 = vector.load %arg4[%c0_2, %c0_3, %c0_4] : memref<3x128x128xf32, #tpu.memory_space<vmem>>, vector<1x128x128xf32>
    %3 = vector.shape_cast %2 : vector<1x128x128xf32> to vector<128x128xf32>
    %cst = arith.constant dense<0.000000e+00> : vector<16x128xf32>
    %4 = tpu.matmul %1, %3, %cst {dimension_numbers = #tpu.dot_dimension_numbers<[1], [0], [0], [1], [0, 0, 1, 1], [], []>} : vector<16x128xf32>, vector<128x128xf32>, vector<16x128xf32> -> vector<16x128xf32>
    %c0_5 = arith.constant 0 : index
    %c0_6 = arith.constant 0 : index
    %5 = vector.load %arg5[%c0_5, %c0_6] : memref<3x128xf32, #tpu.memory_space<vmem>>, vector<1x128xf32>
    %6 = vector.broadcast %5 : vector<1x128xf32> to vector<16x128xf32>
    %7 = arith.addf %4, %6 : vector<16x128xf32>
    %cst_7 = arith.constant 2.000000e-01 : f32
    %8 = vector.broadcast %cst_7 : f32 to vector<16x128xf32>
    %9 = arith.mulf %8, %7 : vector<16x128xf32>
    %10 = arith.maximumf %7, %9 : vector<16x128xf32>
    %c1 = arith.constant 1 : index
    %c0_8 = arith.constant 0 : index
    %c0_9 = arith.constant 0 : index
    %11 = vector.load %arg4[%c1, %c0_8, %c0_9] : memref<3x128x128xf32, #tpu.memory_space<vmem>>, vector<1x128x128xf32>
    %12 = vector.shape_cast %11 : vector<1x128x128xf32> to vector<128x128xf32>
    %cst_10 = arith.constant dense<0.000000e+00> : vector<16x128xf32>
    %13 = tpu.matmul %10, %12, %cst_10 {dimension_numbers = #tpu.dot_dimension_numbers<[1], [0], [0], [1], [0, 0, 1, 1], [], []>} : vector<16x128xf32>, vector<128x128xf32>, vector<16x128xf32> -> vector<16x128xf32>
    %c1_11 = arith.constant 1 : index
    %c0_12 = arith.constant 0 : index
    %14 = vector.load %arg5[%c1_11, %c0_12] : memref<3x128xf32, #tpu.memory_space<vmem>>, vector<1x128xf32>
    %15 = vector.broadcast %14 : vector<1x128xf32> to vector<16x128xf32>
    %16 = arith.addf %13, %15 : vector<16x128xf32>
    %cst_13 = arith.constant 2.000000e-01 : f32
    %17 = vector.broadcast %cst_13 : f32 to vector<16x128xf32>
    %18 = arith.mulf %17, %16 : vector<16x128xf32>
    %19 = arith.maximumf %16, %18 : vector<16x128xf32>
    %c2 = arith.constant 2 : index
    %c0_14 = arith.constant 0 : index
    %c0_15 = arith.constant 0 : index
    %20 = vector.load %arg4[%c2, %c0_14, %c0_15] : memref<3x128x128xf32, #tpu.memory_space<vmem>>, vector<1x128x128xf32>
    %21 = vector.shape_cast %20 : vector<1x128x128xf32> to vector<128x128xf32>
    %cst_16 = arith.constant dense<0.000000e+00> : vector<16x128xf32>
    %22 = tpu.matmul %19, %21, %cst_16 {dimension_numbers = #tpu.dot_dimension_numbers<[1], [0], [0], [1], [0, 0, 1, 1], [], []>} : vector<16x128xf32>, vector<128x128xf32>, vector<16x128xf32> -> vector<16x128xf32>
    %c2_17 = arith.constant 2 : index
    %c0_18 = arith.constant 0 : index
    %23 = vector.load %arg5[%c2_17, %c0_18] : memref<3x128xf32, #tpu.memory_space<vmem>>, vector<1x128xf32>
    %24 = vector.broadcast %23 : vector<1x128xf32> to vector<16x128xf32>
    %25 = arith.addf %22, %24 : vector<16x128xf32>
    %26 = vector.shape_cast %25 : vector<16x128xf32> to vector<1x16x128xf32>
    %c0_19 = arith.constant 0 : index
    %c0_20 = arith.constant 0 : index
    %c0_21 = arith.constant 0 : index
    %27 = vector.load %arg1[%c0_19, %c0_20, %c0_21] : memref<1x16x4xi32, #tpu.memory_space<vmem>>, vector<1x16x4xi32>
    %28 = tpu.iota {dimensions = array<i32: 2>} : vector<1x16x16xi32>
    %cst_22 = arith.constant 0.000000e+00 : f32
    %29 = vector.broadcast %cst_22 : f32 to vector<1x16x16xf32>
    %30 = vector.extract_strided_slice %27 {offsets = [0, 0, 0], sizes = [1, 16, 1], strides = [1, 1, 1]} : vector<1x16x4xi32> to vector<1x16x1xi32>
    %31 = vector.broadcast %30 : vector<1x16x1xi32> to vector<1x16x16xi32>
    %32 = arith.cmpi eq, %31, %28 : vector<1x16x16xi32>
    %33 = vector.extract_strided_slice %26 {offsets = [0, 0, 0], sizes = [1, 16, 1], strides = [1, 1, 1]} : vector<1x16x128xf32> to vector<1x16x1xf32>
    %cst_23 = arith.constant 0.000000e+00 : f32
    %34 = vector.shape_cast %33 : vector<1x16x1xf32> to vector<1x16x1xf32>
    %35 = vector.broadcast %34 : vector<1x16x1xf32> to vector<1x16x16xf32>
    %36 = vector.broadcast %cst_23 : f32 to vector<1x16x16xf32>
    %37 = arith.select %32, %35, %36 : vector<1x16x16xi1>, vector<1x16x16xf32>
    %38 = arith.addf %29, %37 : vector<1x16x16xf32>
    %39 = vector.extract_strided_slice %27 {offsets = [0, 0, 1], sizes = [1, 16, 1], strides = [1, 1, 1]} : vector<1x16x4xi32> to vector<1x16x1xi32>
    %40 = vector.broadcast %39 : vector<1x16x1xi32> to vector<1x16x16xi32>
    %41 = arith.cmpi eq, %40, %28 : vector<1x16x16xi32>
    %42 = vector.extract_strided_slice %26 {offsets = [0, 0, 1], sizes = [1, 16, 1], strides = [1, 1, 1]} : vector<1x16x128xf32> to vector<1x16x1xf32>
    %cst_24 = arith.constant 0.000000e+00 : f32
    %43 = vector.shape_cast %42 : vector<1x16x1xf32> to vector<1x16x1xf32>
    %44 = vector.broadcast %43 : vector<1x16x1xf32> to vector<1x16x16xf32>
    %45 = vector.broadcast %cst_24 : f32 to vector<1x16x16xf32>
    %46 = arith.select %41, %44, %45 : vector<1x16x16xi1>, vector<1x16x16xf32>
    %47 = arith.addf %38, %46 : vector<1x16x16xf32>
    %48 = vector.extract_strided_slice %27 {offsets = [0, 0, 2], sizes = [1, 16, 1], strides = [1, 1, 1]} : vector<1x16x4xi32> to vector<1x16x1xi32>
    %49 = vector.broadcast %48 : vector<1x16x1xi32> to vector<1x16x16xi32>
    %50 = arith.cmpi eq, %49, %28 : vector<1x16x16xi32>
    %51 = vector.extract_strided_slice %26 {offsets = [0, 0, 2], sizes = [1, 16, 1], strides = [1, 1, 1]} : vector<1x16x128xf32> to vector<1x16x1xf32>
    %cst_25 = arith.constant 0.000000e+00 : f32
    %52 = vector.shape_cast %51 : vector<1x16x1xf32> to vector<1x16x1xf32>
    %53 = vector.broadcast %52 : vector<1x16x1xf32> to vector<1x16x16xf32>
    %54 = vector.broadcast %cst_25 : f32 to vector<1x16x16xf32>
    %55 = arith.select %50, %53, %54 : vector<1x16x16xi1>, vector<1x16x16xf32>
    %56 = arith.addf %47, %55 : vector<1x16x16xf32>
    %57 = vector.extract_strided_slice %27 {offsets = [0, 0, 3], sizes = [1, 16, 1], strides = [1, 1, 1]} : vector<1x16x4xi32> to vector<1x16x1xi32>
    %58 = vector.broadcast %57 : vector<1x16x1xi32> to vector<1x16x16xi32>
    %59 = arith.cmpi eq, %58, %28 : vector<1x16x16xi32>
    %60 = vector.extract_strided_slice %26 {offsets = [0, 0, 3], sizes = [1, 16, 1], strides = [1, 1, 1]} : vector<1x16x128xf32> to vector<1x16x1xf32>
    %cst_26 = arith.constant 0.000000e+00 : f32
    %61 = vector.shape_cast %60 : vector<1x16x1xf32> to vector<1x16x1xf32>
    %62 = vector.broadcast %61 : vector<1x16x1xf32> to vector<1x16x16xf32>
    %63 = vector.broadcast %cst_26 : f32 to vector<1x16x16xf32>
    %64 = arith.select %59, %62, %63 : vector<1x16x16xi1>, vector<1x16x16xf32>
    %65 = arith.addf %56, %64 : vector<1x16x16xf32>
    %66 = arith.truncf %65 : vector<1x16x16xf32> to vector<1x16x16xbf16>
    %c0_27 = arith.constant 0 : index
    %c0_28 = arith.constant 0 : index
    %c0_29 = arith.constant 0 : index
    %67 = vector.load %arg3[%c0_27, %c0_28, %c0_29] : memref<1x16x128xbf16, #tpu.memory_space<vmem>>, vector<1x16x128xbf16>
    "tpu.trace_start"() <{level = 10 : i32, message = "bnm,bmd->bnd"}> : () -> ()
    %cst_30 = arith.constant dense<0.000000e+00> : vector<1x16x128xf32>
    %68 = tpu.matmul %66, %67, %cst_30 {dimension_numbers = #tpu.dot_dimension_numbers<[2], [1], [1], [2], [0, 0, 0, 1, 1, 2], [0], [0]>} : vector<1x16x16xbf16>, vector<1x16x128xbf16>, vector<1x16x128xf32> -> vector<1x16x128xf32>
    "tpu.trace_stop"() : () -> ()
    %69 = vector.shape_cast %68 : vector<1x16x128xf32> to vector<16x128xf32>
    %70 = arith.truncf %69 : vector<16x128xf32> to vector<16x128xbf16>
    %c0_31 = arith.constant 0 : index
    %c0_32 = arith.constant 0 : index
    %71 = vector.load %arg6[%c0_31, %c0_32] : memref<128x128xbf16, #tpu.memory_space<vmem>>, vector<128x128xbf16>
    %cst_33 = arith.constant dense<0.000000e+00> : vector<16x128xf32>
    %72 = tpu.matmul %70, %71, %cst_33 {dimension_numbers = #tpu.dot_dimension_numbers<[1], [0], [0], [1], [0, 0, 1, 1], [], []>} : vector<16x128xbf16>, vector<128x128xbf16>, vector<16x128xf32> -> vector<16x128xf32>
    %73 = vector.shape_cast %72 : vector<16x128xf32> to vector<1x16x128xf32>
    %74 = arith.truncf %73 : vector<1x16x128xf32> to vector<1x16x128xbf16>
    %c0_34 = arith.constant 0 : index
    %c0_35 = arith.constant 0 : index
    %c0_36 = arith.constant 0 : index
    %75 = vector.load %arg7[%c0_34, %c0_35, %c0_36] : memref<1x16x128xbf16, #tpu.memory_space<vmem>>, vector<1x16x128xbf16>
    tpu.vector_store %arg7[%c0_34, %c0_35, %c0_36], %74 {strides = array<i32>} : memref<1x16x128xbf16, #tpu.memory_space<vmem>>, vector<1x16x128xbf16>,
    %cst_37 = arith.constant dense<0.000000e+00> : vector<128xf32>
    %76 = vector.multi_reduction <add>, %72, %cst_37 [0] : vector<16x128xf32> to vector<128xf32>
    %77 = vector.shape_cast %76 : vector<128xf32> to vector<1x128xf32>
    %78 = vector.shape_cast %77 : vector<1x128xf32> to vector<1x1x128xf32>
    %c0_38 = arith.constant 0 : index
    %c0_39 = arith.constant 0 : index
    %c0_40 = arith.constant 0 : index
    %79 = vector.load %arg8[%c0_38, %c0_39, %c0_40] : memref<1x2x128xf32, #tpu.memory_space<vmem>>, vector<1x1x128xf32>
    tpu.vector_store %arg8[%c0_38, %c0_39, %c0_40], %78 {strides = array<i32>} : memref<1x2x128xf32, #tpu.memory_space<vmem>>, vector<1x1x128xf32>,
    %80 = arith.mulf %72, %72 : vector<16x128xf32>
    %cst_41 = arith.constant dense<0.000000e+00> : vector<128xf32>
    %81 = vector.multi_reduction <add>, %80, %cst_41 [0] : vector<16x128xf32> to vector<128xf32>
    %82 = vector.shape_cast %81 : vector<128xf32> to vector<1x128xf32>
    %83 = vector.shape_cast %82 : vector<1x128xf32> to vector<1x1x128xf32>
    %c0_42 = arith.constant 0 : index
    %c1_43 = arith.constant 1 : index
    %c0_44 = arith.constant 0 : index
    %84 = vector.load %arg8[%c0_42, %c1_43, %c0_44] : memref<1x2x128xf32, #tpu.memory_space<vmem>>, vector<1x1x128xf32>
    tpu.vector_store %arg8[%c0_42, %c1_43, %c0_44], %83 {strides = array<i32>} : memref<1x2x128xf32, #tpu.memory_space<vmem>>, vector<1x1x128xf32>,
    return
  }
  func.func @transform_0(%arg0: i32) -> (i32, i32, i32) {
    %c0_i32 = arith.constant 0 : i32
    %c0_i32_0 = arith.constant 0 : i32
    %c0_i32_1 = arith.constant 0 : i32
    return %arg0, %c0_i32, %c0_i32_0 : i32, i32, i32
  }
  func.func @transform_1(%arg0: i32) -> (i32, i32, i32) {
    %c0_i32 = arith.constant 0 : i32
    %c0_i32_0 = arith.constant 0 : i32
    %c0_i32_1 = arith.constant 0 : i32
    return %arg0, %c0_i32, %c0_i32_0 : i32, i32, i32
  }
  func.func @transform_2(%arg0: i32) -> (i32, i32, i32) {
    %c0_i32 = arith.constant 0 : i32
    %c0_i32_0 = arith.constant 0 : i32
    %c0_i32_1 = arith.constant 0 : i32
    return %arg0, %c0_i32, %c0_i32_0 : i32, i32, i32
  }
  func.func @transform_3(%arg0: i32) -> (i32, i32, i32) {
    %c0_i32 = arith.constant 0 : i32
    %c0_i32_0 = arith.constant 0 : i32
    %c0_i32_1 = arith.constant 0 : i32
    %c0_i32_2 = arith.constant 0 : i32
    return %c0_i32, %c0_i32_0, %c0_i32_1 : i32, i32, i32
  }
  func.func @transform_4(%arg0: i32) -> (i32, i32) {
    %c0_i32 = arith.constant 0 : i32
    %c0_i32_0 = arith.constant 0 : i32
    %c0_i32_1 = arith.constant 0 : i32
    return %c0_i32, %c0_i32_0 : i32, i32
  }
  func.func @transform_5(%arg0: i32) -> (i32, i32) {
    %c0_i32 = arith.constant 0 : i32
    %c0_i32_0 = arith.constant 0 : i32
    %c0_i32_1 = arith.constant 0 : i32
    return %c0_i32, %c0_i32_0 : i32, i32
  }
  func.func @transform_6(%arg0: i32) -> (i32, i32, i32) {
    %c0_i32 = arith.constant 0 : i32
    %c0_i32_0 = arith.constant 0 : i32
    %c0_i32_1 = arith.constant 0 : i32
    return %arg0, %c0_i32, %c0_i32_0 : i32, i32, i32
  }
  func.func @transform_7(%arg0: i32) -> (i32, i32, i32) {
    %c0_i32 = arith.constant 0 : i32
    %c0_i32_0 = arith.constant 0 : i32
    %c0_i32_1 = arith.constant 0 : i32
    return %arg0, %c0_i32, %c0_i32_0 : i32, i32, i32
  }
}

</mosaic_0001>

<bundles_post_ra>
// kernel: local_gcn_forward.3
= control target key start
LH: loop header
LB: loop body
LE: loop exit
PB: predicated region body
PF: predicated region fallthrough
CT: control target
= control target key end

     0   :  { %v21_v1 = vlaneseq  ;;  %s129_s0 = inlined_call_operand.vmem [shape: bf16[32,128], index: 0, kind: input, shape index: {}]   ;;  %s130_s1 = inlined_call_operand.vmem [shape: f32[2,128], index: 1, kind: input, shape index: {}]   ;;  %s131_s2 = inlined_call_operand.hbm [shape: f32[32,128], index: 2, kind: output, shape index: {}]  }
   0x1   :  { %v66_v0 = vld [vmem:[%s129_s0] sm:$0xff]   ;;  %v73_v2 = vld [vmem:[%s129_s0 + $0x8] sm:$0xff]  }
   0x2   :  { %7 = vsyncpa [#allocation3], 0  ;;  %v22_v3 = vshrl.u32 %v21_v1, 7  ;;  %v12_v4 = vld [vmem:[%s130_s1] sm:$0x3]  ;;  %v67_v5 = vunpack.c.l.bf16 %v66_v0  ;;  %v68_v6 = vunpack.c.h.bf16 %v66_v0  ;;  %v71_v9 = vunpack.c.l.bf16 %v73_v2  ;;  %s99_s0 = smov [#allocation2]  }
   0x3   :  { %v72_v10 = vunpack.c.h.bf16 %v73_v2  ;;  %s54_s15 = sshll.u32 %s99_s0, 4  ;;  %s55_s15 = int_to_ptr.vmem [resolvable:$true] %s54_s15 }
   0x4   :  { %v23_v7 = vsub.s32 0, %v22_v3  ;;  %v31_v8 = vsub.s32 1, %v22_v3  ;;  %s77_s1 = scalar_lea.vmem %s55_s15, 512  ;;  %p82_p1 = scmp.lt.s32.totalorder %s55_s15, %s55_s15 }
   0x5   :  { %p78_p0 = scmp.ne.s32.totalorder %s55_s15, %s77_s1  ;;  %p83_p2 = scmp.lt.s32.totalorder %s77_s1, %s77_s1 }
   0x6   :  { %v24_v11 = vrot.slane %v12_v4, %v23_v7  ;;  %v32_v12 = vrot.slane %v12_v4, %v31_v8 }
   0x7   :  { %p84_p3 = por %p83_p2, %p82_p1 }
   0x8   :  { %v25_v13 = vmul.f32 %v67_v5, %v24_v11  ;;  %v26_v14 = vmul.f32 %v68_v6, %v24_v11  ;;  %v27_v15 = vmul.f32 %v71_v9, %v24_v11  ;;  %v28_v16 = vmul.f32 %v72_v10, %v24_v11 }
   0x9   :  { %p85_p4 = pnand %p84_p3, %p78_p0 }
   0xa   :  { %v33_v17 = vadd.f32 %v32_v12, %v25_v13  ;;  %v34_v18 = vadd.f32 %v32_v12, %v26_v14  ;;  %v35_v19 = vadd.f32 %v32_v12, %v27_v15  ;;  %v36_v20 = vadd.f32 %v32_v12, %v28_v16 }
   0xc   :  { %v37_v21 = vmul.f32 0.2, %v33_v17  ;;  %v38_v22 = vmul.f32 0.2, %v34_v18  ;;  %v39_v23 = vmul.f32 0.2, %v35_v19 }
   0xd   :  { %v40_v24 = vmul.f32 0.2, %v36_v20 }
   0xe   :  { %v41_v25 = vmax.f32 %v33_v17, %v37_v21  ;;  %v42_v26 = vmax.f32 %v34_v18, %v38_v22  ;;  %v43_v27 = vmax.f32 %v35_v19, %v39_v23 }
   0xf   :  { %v44_v28 = vmax.f32 %v36_v20, %v40_v24 }
  0x10   :  { %45 = vst [vmem:[#allocation2] sm:$0xff] %v41_v25  ;;  %46 = vst [vmem:[#allocation2 + $0x8] sm:$0xff] %v42_v26 }
  0x11   :  { %47 = vst [vmem:[#allocation2 + $0x10] sm:$0xff] %v43_v27  ;;  %48 = vst [vmem:[#allocation2 + $0x18] sm:$0xff] %v44_v28 }
  0x12   :  { %88 = shalt.err (!%p85_p4)
}
  0x13   :  { %s100_s16 = smov 128   ;;  %s101_s17 = smov 8  }
  0x14   :  { %60 = dma.vmem_to_hbm [thread:$0]  %s55_s15, 512, %s131_s2, [#allocation3], %s100_s16, %s100_s16, %s101_s17  }
  0x15   :  { %97 = dma.done.wait [#allocation3], 512  }
  0x16   :  { %98 = vsyncadd [#allocation3], 4294966784 }
  0x17   :  { %64 = vsyncpa [#allocation3], 1 }

// kernel: local_gcn_forward.2
= control target key start
LH: loop header
LB: loop body
LE: loop exit
PB: predicated region body
PF: predicated region fallthrough
CT: control target
= control target key end

     0   :  { %s1374_s24 = smov 0   ;;  %s1607_s0 = inlined_call_operand.vmem [shape: s32[2,16,4], index: 0, kind: input, shape index: {}]   ;;  %s1608_s1 = inlined_call_operand.vmem [shape: f32[2,16,128], index: 1, kind: input, shape index: {}]   ;;  %s1609_s2 = inlined_call_operand.vmem [shape: bf16[2,16,128], index: 2, kind: input, shape index: {}]   ;;  %s1610_s3 = inlined_call_operand.vmem [shape: f32[3,128,128], index: 3, kind: input, shape index: {}]   ;;  %s1611_s4 = inlined_call_operand.vmem [shape: f32[3,128], index: 4, kind: input, shape index: {}]   ;;  %s1612_s5 = inlined_call_operand.vmem [shape: bf16[128,128], index: 5, kind: input, shape index: {}]   ;;  %s1613_s6 = inlined_call_operand.vmem [shape: bf16[2,16,128], index: 6, kind: output, shape index: {0}]   ;;  %s1614_s7 = inlined_call_operand.vmem [shape: f32[2,2,128], index: 7, kind: output, shape index: {1}]  }
   0x1 LB: > { %s1015_s25 = sadd.s32 4294967295, %s1326_s24   ;;  %p1019_p0 = scmp.ge.s32.totalorder %s1326_s24, 1  ;;  %s1326_s24 = sphi %s1374_s24, %s18_s24  }
   0x2   : > { %p260_p1 = scmp.lt.s32.totalorder %s1326_s24, 3 }
   0x4   : > { %p261_p2 = pnand %p1019_p0, %p260_p1 }
   0x5   : > { %p306_p3 = scmp.lt.s32.totalorder (!%p261_p2), %s1015_s25, 1 }
   0x6   : > { %264 = sbr.rel (%p261_p2) target bundleno = 1204 (0x4b4), region = 44 }
   0xb   : > { %v348_v0 = vld [vmem:[%s1610_s3 + $0x78] sm:$0xff]  ;;  %v347_v1 = vld [vmem:[%s1610_s3 + $0x70] sm:$0xff]  ;;  %v346_v2 = vld [vmem:[%s1610_s3 + $0x68] sm:$0xff]  ;;  %s1616_s25 = smov (!%p306_p3, %s1015_s25), 1  ;;  %v1328_v60 = vmov 1   ;;  %v1329_v62 = vmov 2  }
   0xc   : > { %1154 = vmatprep.subr.mxu0 %v348_v0  ;;  %v345_v3 = vld [vmem:[%s1610_s3 + $0x60] sm:$0xff]  ;;  %s1078_s11 = sshll.u32 %s1616_s25, 4  ;;  %v1045_v4 = vld [vmem:[%s1610_s3 + $0xf8] sm:$0xff]  ;;  %v1044_v7 = vld [vmem:[%s1610_s3 + $0xf0] sm:$0xff]  ;;  %1299 = vset.pattern.permute.xlu1 %v1328_v60  ;;  %v1330_v63 = vmov 3   ;;  %s1080_s12 = sshll.u32 %s1616_s25, 3 }
   0xd   : > { %1155 = vmatpush3.msra.mxu0 %v348_v0  ;;  %s1402_s14 = scalar_lea.vmem %s1608_s1, %s1078_s11  ;;  %v344_v5 = vld [vmem:[%s1610_s3 + $0x58] sm:$0xff]  ;;  %1189 = vmatprep.subr.mxu1 %v1045_v4  ;;  %v343_v8 = vld [vmem:[%s1610_s3 + $0x50] sm:$0xff]  ;;  %v1043_v9 = vld [vmem:[%s1610_s3 + $0xe8] sm:$0xff]  ;;  %s310_s29 = scalar_lea.vmem %s1607_s0, %s1078_s11  ;;  %v1331_v0 = vmov 0   ;;  %vm1333_vm0 = vmmov 0   ;;  %vm726_vm9 = vcmask 130048  }
   0xe   : > { %1156 = vmatprep.subr.mxu0 %v347_v1  ;;  %v331_v6 = vld [vmem:[%s1402_s14] sm:$0xff]  ;;  %1190 = vmatpush3.msra.mxu1 %v1045_v4  ;;  %v342_v10 = vld [vmem:[%s1610_s3 + $0x48] sm:$0xff]  ;;  %v1041_v13 = vld [vmem:[%s1610_s3 + $0xd8] sm:$0xff]  ;;  %s320_s16 = scalar_lea.vmem %s1609_s2, %s1080_s12  ;;  %s325_s15 = scalar_lea.vmem %s1613_s6, %s1080_s12 }
   0xf   : > { %1157 = vmatpush3.msra.mxu0 %v347_v1  ;;  %1186 = vmatprep.mubr.f32.mxu0 %v331_v6  ;;  %v1042_v11 = vld [vmem:[%s1610_s3 + $0xe0] sm:$0xff]  ;;  %v340_v14 = vld [vmem:[%s1610_s3 + $0x38] sm:$0xff]  ;;  %v1040_v15 = vld [vmem:[%s1610_s3 + $0xd0] sm:$0xff] }
  0x10   : > { %1158 = vmatprep.subr.mxu0 %v346_v2  ;;  %1191 = vmatprep.subr.mxu1 %v1044_v7  ;;  %v341_v12 = vld [vmem:[%s1610_s3 + $0x40] sm:$0xff]  ;;  %v339_v16 = vld [vmem:[%s1610_s3 + $0x30] sm:$0xff]  ;;  %v1039_v17 = vld [vmem:[%s1610_s3 + $0xc8] sm:$0xff] }
  0x11   : > { %1159 = vmatpush3.msra.mxu0 %v346_v2  ;;  %1192 = vmatpush3.msra.mxu1 %v1044_v7  ;;  %v338_v18 = vld [vmem:[%s1610_s3 + $0x28] sm:$0xff]  ;;  %v1038_v19 = vld [vmem:[%s1610_s3 + $0xc0] sm:$0xff]  ;;  %v1037_v21 = vld [vmem:[%s1610_s3 + $0xb8] sm:$0xff] }
  0x12   : > { %1160 = vmatprep.subr.mxu0 %v345_v3  ;;  %1193 = vmatprep.subr.mxu1 %v1043_v9  ;;  %v337_v20 = vld [vmem:[%s1610_s3 + $0x20] sm:$0xff]  ;;  %v336_v22 = vld [vmem:[%s1610_s3 + $0x18] sm:$0xff]  ;;  %v1036_v23 = vld [vmem:[%s1610_s3 + $0xb0] sm:$0xff] }
  0x13   : > { %1161 = vmatpush3.msra.mxu0 %v345_v3  ;;  %1194 = vmatpush3.msra.mxu1 %v1043_v9  ;;  %v335_v24 = vld [vmem:[%s1610_s3 + $0x10] sm:$0xff]  ;;  %v1035_v25 = vld [vmem:[%s1610_s3 + $0xa8] sm:$0xff]  ;;  %v333_v27 = vld [vmem:[%s1610_s3] sm:$0xff] }
  0x14   : > { %1162 = vmatprep.subr.mxu0 %v344_v5  ;;  %1195 = vmatprep.subr.mxu1 %v1042_v11  ;;  %v334_v26 = vld [vmem:[%s1610_s3 + $0x8] sm:$0xff]  ;;  %v1034_v29 = vld [vmem:[%s1610_s3 + $0xa0] sm:$0xff]  ;;  %v1033_v30 = vld [vmem:[%s1610_s3 + $0x98] sm:$0xff] }
  0x15   : > { %1163 = vmatpush3.msra.mxu0 %v344_v5  ;;  %1196 = vmatpush3.msra.mxu1 %v1042_v11  ;;  %v332_v28 = vld [vmem:[%s1402_s14 + $0x8] sm:$0xff]  ;;  %v1032_v31 = vld [vmem:[%s1610_s3 + $0x90] sm:$0xff]  ;;  %v1030_v33 = vld [vmem:[%s1610_s3 + $0x80] sm:$0xff] }
  0x16   : > { %1164 = vmatprep.subr.mxu0 %v343_v8  ;;  %1197 = vmatprep.subr.mxu1 %v1041_v13  ;;  %v1031_v32 = vld [vmem:[%s1610_s3 + $0x88] sm:$0xff]  ;;  %v1062_v34 = vld [vmem:[%s1610_s3 + $0x178] sm:$0xff]  ;;  %v1061_v35 = vld [vmem:[%s1610_s3 + $0x170] sm:$0xff] }
  0x17   : > { %1165 = vmatpush3.msra.mxu0 %v343_v8  ;;  %1198 = vmatpush3.msra.mxu1 %v1041_v13  ;;  %v1060_v36 = vld [vmem:[%s1610_s3 + $0x168] sm:$0xff]  ;;  %v1059_v37 = vld [vmem:[%s1610_s3 + $0x160] sm:$0xff]  ;;  %v1058_v38 = vld [vmem:[%s1610_s3 + $0x158] sm:$0xff] }
  0x18   : > { %1166 = vmatprep.subr.mxu0 %v342_v10  ;;  %1199 = vmatprep.subr.mxu1 %v1040_v15  ;;  %v1057_v39 = vld [vmem:[%s1610_s3 + $0x150] sm:$0xff]  ;;  %v1056_v40 = vld [vmem:[%s1610_s3 + $0x148] sm:$0xff]  ;;  %v1055_v41 = vld [vmem:[%s1610_s3 + $0x140] sm:$0xff] }
  0x19   : > { %1167 = vmatpush3.msra.mxu0 %v342_v10  ;;  %1200 = vmatpush3.msra.mxu1 %v1040_v15  ;;  %v1054_v42 = vld [vmem:[%s1610_s3 + $0x138] sm:$0xff]  ;;  %v1053_v43 = vld [vmem:[%s1610_s3 + $0x130] sm:$0xff]  ;;  %v1052_v44 = vld [vmem:[%s1610_s3 + $0x128] sm:$0xff] }
  0x1a   : > { %1168 = vmatprep.subr.mxu0 %v341_v12  ;;  %1201 = vmatprep.subr.mxu1 %v1039_v17  ;;  %v1029_v45 = vld [vmem:[%s1611_s4] ss:$0 sm:$0xff]  ;;  %v1050_v55 = vld [vmem:[%s1610_s3 + $0x118] sm:$0xff]  ;;  %v1049_v56 = vld [vmem:[%s1610_s3 + $0x110] sm:$0xff] }
  0x1b   : > { %1169 = vmatpush3.msra.mxu0 %v341_v12  ;;  %1202 = vmatpush3.msra.mxu1 %v1039_v17  ;;  %v1051_v54 = vld [vmem:[%s1610_s3 + $0x120] sm:$0xff]  ;;  %v1048_v57 = vld [vmem:[%s1610_s3 + $0x108] sm:$0xff] }
  0x1c   : > { %1170 = vmatprep.subr.mxu0 %v340_v14  ;;  %1203 = vmatprep.subr.mxu1 %v1038_v19  ;;  %v1047_v58 = vld [vmem:[%s1610_s3 + $0x100] sm:$0xff]  ;;  %v632_v61 = vld [vmem:[%s310_s29 + $0x8] sm:$0xff] }
  0x1d   : > { %1171 = vmatpush3.msra.mxu0 %v340_v14  ;;  %1204 = vmatpush3.msra.mxu1 %v1038_v19  ;;  %v631_v59 = vld [vmem:[%s310_s29] sm:$0xff] }
  0x1e   : > { %1172 = vmatprep.subr.mxu0 %v339_v16  ;;  %1205 = vmatprep.subr.mxu1 %v1037_v21  ;;  %v1046_v1 = vld [vmem:[%s1611_s4 + $0x1] ss:$0 sm:$0xff]  ;;  %v1063_v10 = vld [vmem:[%s1611_s4 + $0x2] ss:$0 sm:$0xff] }
  0x1f   : > { %1173 = vmatpush3.msra.mxu0 %v339_v16  ;;  %1206 = vmatpush3.msra.mxu1 %v1037_v21  ;;  %v1311_v15 = vld [vmem:[%s320_s16] sm:$0xff]   ;;  %v1332_v16 = vmov 0.0   ;;  %s1028_s16 = sshll.u32 %s1616_s25, 1 }
  0x20   : > { %1174 = vmatprep.subr.mxu0 %v338_v18  ;;  %1207 = vmatprep.subr.mxu1 %v1036_v23  ;;  %s329_s18 = scalar_lea.vmem %s1614_s7, %s1028_s16 }
  0x21   : > { %1175 = vmatpush3.msra.mxu0 %v338_v18  ;;  %1208 = vmatpush3.msra.mxu1 %v1036_v23 }
  0x22   : > { %1176 = vmatprep.subr.mxu0 %v337_v20  ;;  %1209 = vmatprep.subr.mxu1 %v1035_v25 }
  0x23   : > { %1177 = vmatpush3.msra.mxu0 %v337_v20  ;;  %1210 = vmatpush3.msra.mxu1 %v1035_v25 }
  0x24   : > { %1178 = vmatprep.subr.mxu0 %v336_v22  ;;  %1211 = vmatprep.subr.mxu1 %v1034_v29 }
  0x25   : > { %1179 = vmatpush3.msra.mxu0 %v336_v22  ;;  %1212 = vmatpush3.msra.mxu1 %v1034_v29 }
  0x26   : > { %1180 = vmatprep.subr.mxu0 %v335_v24  ;;  %1213 = vmatprep.subr.mxu1 %v1033_v30 }
  0x27   : > { %1181 = vmatpush3.msra.mxu0 %v335_v24  ;;  %1214 = vmatpush3.msra.mxu1 %v1033_v30 }
  0x28   : > { %1182 = vmatprep.subr.mxu0 %v334_v26  ;;  %1215 = vmatprep.subr.mxu1 %v1032_v31 }
  0x29   : > { %1183 = vmatpush3.msra.mxu0 %v334_v26  ;;  %1216 = vmatpush3.msra.mxu1 %v1032_v31  ;;  %v633_v26 = vlaneseq }
  0x2a   : > { %1184 = vmatprep.subr.mxu0 %v333_v27  ;;  %1217 = vmatprep.subr.mxu1 %v1031_v32 }
  0x2b   : > { %1185 = vmatpush3.msra.mxu0 %v333_v27  ;;  %1218 = vmatpush3.msra.mxu1 %v1031_v32  ;;  %v634_v29 = vand.u32 127, %v633_v26 }
  0x2c   : > { %1187 = vmatmul.mubr.f32.vlgmr.msra.gmra.mxu0 %v332_v28  ;;  %1219 = vmatprep.subr.mxu1 %v1030_v33 }
  0x2d   : > { %1220 = vmatpush3.msra.mxu1 %v1030_v33  ;;  %1224 = vmatprep.subr.mxu0 %v1062_v34 }
  0x2e   : > { %1225 = vmatpush3.msra.mxu0 %v1062_v34  ;;  %1301 = vset.pattern.permute.xlu0 %v1329_v62 }
  0x2f   : > { %1226 = vmatprep.subr.mxu0 %v1061_v35  ;;  %658 = vperm.xlu1 %1299, %v631_v59  }
  0x30   : > { %1227 = vmatpush3.msra.mxu0 %v1061_v35  ;;  %681 = vperm.xlu0 %1301, %v632_v61  }
  0x31   : > { %1228 = vmatprep.subr.mxu0 %v1060_v36  ;;  %1259 = vmatprep.subr.bf16.mxu1 %v1332_v16 }
  0x32   : > { %1229 = vmatpush3.msra.mxu0 %v1060_v36 }
  0x33   : > { %1230 = vmatprep.subr.mxu0 %v1059_v37  ;;  %661 = vperm.xlu1 %1299, %v632_v61  }
  0x34   : > { %1231 = vmatpush3.msra.mxu0 %v1059_v37  ;;  %1302 = vset.pattern.permute.xlu0 %v1330_v63 }
  0x35   : > { %1232 = vmatprep.subr.mxu0 %v1058_v38  ;;  %698 = vperm.xlu0 %1302, %v631_v59  }
  0x36   : > { %1233 = vmatpush3.msra.mxu0 %v1058_v38 }
  0x37   : > { %1234 = vmatprep.subr.mxu0 %v1057_v39  ;;  %1300 = vset.pattern.permute.xlu1 %v1329_v62 }
  0x38   : > { %1235 = vmatpush3.msra.mxu0 %v1057_v39  ;;  %678 = vperm.xlu1 %1300, %v631_v59  }
  0x39   : > { %1236 = vmatprep.subr.mxu0 %v1056_v40  ;;  %1303 = vset.pattern.permute.xlu0 %v1331_v0 }
  0x3a   : > { %1237 = vmatpush3.msra.mxu0 %v1056_v40  ;;  %636 = vperm.xlu0 %1303, %v631_v59  }
  0x3b   : > { %1238 = vmatprep.subr.mxu0 %v1055_v41 }
  0x3c   : > { %1239 = vmatpush3.msra.mxu0 %v1055_v41  ;;  %1304 = vset.pattern.permute.xlu1 %v1330_v63 }
  0x3d   : > { %1240 = vmatprep.subr.mxu0 %v1054_v42  ;;  %701 = vperm.xlu1 %1304, %v632_v61  }
  0x3e   : > { %1241 = vmatpush3.msra.mxu0 %v1054_v42  ;;  %639 = vperm.xlu0 %1303, %v632_v61  }
  0x3f   : > { %1242 = vmatprep.subr.mxu0 %v1053_v43 }
  0x40   : > { %1243 = vmatpush3.msra.mxu0 %v1053_v43 }
  0x41   : > { %1244 = vmatprep.subr.mxu0 %v1052_v44  ;;  %1305 = vset.pattern.permute.xlu1 %v1331_v0 }
  0x42   : > { %1245 = vmatpush3.msra.mxu0 %v1052_v44 }
  0x43   : > { %1246 = vmatprep.subr.mxu0 %v1051_v54 }
  0x44   : > { %1247 = vmatpush3.msra.mxu0 %v1051_v54  ;;  %v1316_v54 = vld [vmem:[%s1612_s5 + $0x18] sm:$0xff]  }
  0x45   : > { %1248 = vmatprep.subr.mxu0 %v1050_v55 }
  0x46   : > { %1249 = vmatpush3.msra.mxu0 %v1050_v55  ;;  %v1317_v55 = vld [vmem:[%s1612_s5 + $0x10] sm:$0xff]  }
  0x47   : > { %1250 = vmatprep.subr.mxu0 %v1049_v56 }
  0x48   : > { %1251 = vmatpush3.msra.mxu0 %v1049_v56  ;;  %v1318_v56 = vld [vmem:[%s1612_s5 + $0x8] sm:$0xff]  }
  0x49   : > { %1252 = vmatprep.subr.mxu0 %v1048_v57 }
  0x4a   : > { %1253 = vmatpush3.msra.mxu0 %v1048_v57  ;;  %v1319_v57 = vld [vmem:[%s1612_s5] sm:$0xff]  }
  0x4b   : > { %1254 = vmatprep.subr.mxu0 %v1047_v58 }
  0x4c   : > { %1255 = vmatpush3.msra.mxu0 %v1047_v58 }
  0xaa   : > { %v659_v17 = vpop.permute.xlu1 %658 }
  0xab   : > { %v682_v18 = vpop.permute.xlu0 %681  ;;  %vm663_vm3 = vcmp.eq.s32.totalorder %v659_v17, %v634_v29 }
  0xac   : > { %vm684_vm4 = vcmp.eq.s32.totalorder %v682_v18, %v634_v29 }
  0xae   : > { %v662_v19 = vpop.permute.xlu1 %661 }
  0xaf   : > { %vm664_vm1 = vcmp.eq.s32.totalorder %v662_v19, %v634_v29 }
  0xb0   : > { %v699_v20 = vpop.permute.xlu0 %698 }
  0xb1   : > { %vm703_vm8 = vcmp.eq.s32.totalorder %v699_v20, %v634_v29 }
  0xb3   : > { %v679_v21 = vpop.permute.xlu1 %678 }
  0xb4   : > { %vm683_vm6 = vcmp.eq.s32.totalorder %v679_v21, %v634_v29 }
  0xb5   : > { %v637_v22 = vpop.permute.xlu0 %636 }
  0xb6   : > { %vm641_vm5 = vcmp.eq.s32.totalorder %v637_v22, %v634_v29 }
  0xb8   : > { %v702_v23 = vpop.permute.xlu1 %701 }
  0xb9   : > { %v640_v24 = vpop.permute.xlu0 %639  ;;  %vm704_vm7 = vcmp.eq.s32.totalorder %v702_v23, %v634_v29 }
  0xba   : > { %vm642_vm2 = vcmp.eq.s32.totalorder %v640_v24, %v634_v29 }
  0xec   : > { %v1188_v46 = vpop.f32.mrf.mxu0 }
  0xed   : > { %v426_v47 = vadd.f32 %v1188_v46, %v1029_v45 }
  0xee   : > { %v420_v48 = vpop.f32.mrf.mxu0 }
  0xef   : > { %v421_v49 = vadd.f32 %v1029_v45, %v420_v48  ;;  %v430_v50 = vmul.f32 0.2, %v426_v47 }
  0xf1   : > { %v429_v51 = vmul.f32 0.2, %v421_v49  ;;  %v432_v53 = vmax.f32 %v426_v47, %v430_v50 }
  0xf3   : > { %v431_v52 = vmax.f32 %v421_v49, %v429_v51  ;;  %v1312_v49 = vld [vmem:[%s1612_s5 + $0x38] sm:$0xff]   ;;  %v1313_v51 = vld [vmem:[%s1612_s5 + $0x30] sm:$0xff]  }
  0xf5   : > { %1221 = vmatprep.mubr.f32.mxu1 %v431_v52  ;;  %v1314_v52 = vld [vmem:[%s1612_s5 + $0x28] sm:$0xff]  }
  0xf6   : > { %1222 = vmatmul.mubr.f32.vlgmr.msra.gmra.mxu1 %v432_v53  ;;  %v1315_v53 = vld [vmem:[%s1612_s5 + $0x20] sm:$0xff]  }
  0xf7   : > { %1260 = vmatpush3.bf16.msra.mxu1 %v1311_v15  ;;  %1261 = vmatprep.mubr.msk.bf16.mxu1 %vm1333_vm0, %v1332_v16 }
  0xf8   : > { %1265 = vmatprep.subr.bf16.mxu1 %v1332_v16 }
 0x1b6   : > { %v1223_v2 = vpop.f32.mrf.mxu1 }
 0x1b7   : > { %v527_v3 = vadd.f32 %v1223_v2, %v1046_v1 }
 0x1b8   : > { %v521_v4 = vpop.f32.mrf.mxu1 }
 0x1b9   : > { %v522_v5 = vadd.f32 %v1046_v1, %v521_v4  ;;  %v531_v6 = vmul.f32 0.2, %v527_v3 }
 0x1bb   : > { %v530_v7 = vmul.f32 0.2, %v522_v5  ;;  %v533_v9 = vmax.f32 %v527_v3, %v531_v6 }
 0x1bd   : > { %v532_v8 = vmax.f32 %v522_v5, %v530_v7 }
 0x1bf   : > { %1256 = vmatprep.mubr.f32.mxu0 %v532_v8 }
 0x1c0   : > { %1257 = vmatmul.mubr.f32.vlgmr.msra.gmra.mxu0 %v533_v9 }
 0x280   : > { %v1258_v11 = vpop.f32.mrf.mxu0 }
 0x281   : > { %v628_v12 = vadd.f32 %v1258_v11, %v1063_v10 }
 0x282   : > { %v622_v13 = vpop.f32.mrf.mxu0 }
 0x283   : > { %v623_v14 = vadd.f32 %v1063_v10, %v622_v13  ;;  %650 = vperm.xlu1 %1305, %v628_v12  }
 0x285   : > { %645 = vperm.xlu0 %1303, %v623_v14  }
 0x287   : > { %1306 = vset.pattern.permute.xlu1 %v1328_v60 }
 0x288   : > { %670 = vperm.xlu1 %1306, %v628_v12  }
 0x289   : > { %1308 = vset.pattern.permute.xlu0 %v1328_v60 }
 0x28a   : > { %666 = vperm.xlu0 %1308, %v623_v14  }
 0x28c   : > { %1307 = vset.pattern.permute.xlu1 %v1329_v62 }
 0x28d   : > { %690 = vperm.xlu1 %1307, %v628_v12  }
 0x28e   : > { %1310 = vset.pattern.permute.xlu0 %v1330_v63 }
 0x28f   : > { %710 = vperm.xlu0 %1310, %v628_v12  }
 0x291   : > { %686 = vperm.xlu1 %1307, %v623_v14  }
 0x295   : > { %1309 = vset.pattern.permute.xlu1 %v1330_v63 }
 0x296   : > { %706 = vperm.xlu1 %1309, %v623_v14  }
 0x2fe   : > { %v651_v25 = vpop.permute.xlu1 %650 }
 0x2ff   : > { %v654_v33 = vsel %vm642_vm2, %v651_v25, 0.0 }
 0x300   : > { %v646_v27 = vpop.permute.xlu0 %645 }
 0x301   : > { %v653_v39 = vsel %vm641_vm5, %v646_v27, 0.0 }
 0x303   : > { %v671_v28 = vpop.permute.xlu1 %670 }
 0x304   : > { %v674_v32 = vsel %vm664_vm1, %v671_v28, 0.0 }
 0x305   : > { %v667_v30 = vpop.permute.xlu0 %666  ;;  %v676_v37 = vadd.f32 %v674_v32, %v654_v33 }
 0x306   : > { %v673_v34 = vsel %vm663_vm3, %v667_v30, 0.0 }
 0x307   : > { %v675_v41 = vadd.f32 %v673_v34, %v653_v39 }
 0x308   : > { %v691_v31 = vpop.permute.xlu1 %690 }
 0x309   : > { %v694_v35 = vsel %vm684_vm4, %v691_v31, 0.0 }
 0x30a   : > { %v711_v38 = vpop.permute.xlu0 %710  ;;  %v696_v42 = vadd.f32 %v694_v35, %v676_v37 }
 0x30b   : > { %v714_v43 = vsel %vm704_vm7, %v711_v38, 0.0 }
 0x30c   : > { %v687_v36 = vpop.permute.xlu1 %686  ;;  %v716_v47 = vadd.f32 %v714_v43, %v696_v42 }
 0x30d   : > { %v693_v40 = vsel %vm683_vm6, %v687_v36, 0.0 }
 0x30e   : > { %v695_v44 = vadd.f32 %v693_v40, %v675_v41 }
 0x311   : > { %v707_v45 = vpop.permute.xlu1 %706 }
 0x312   : > { %v713_v46 = vsel %vm703_vm8, %v707_v45, 0.0 }
 0x313   : > { %v715_v48 = vadd.f32 %v713_v46, %v695_v44 }
 0x315   : > { %v717_v50 = vpack.c.bf16 %v716_v47, %v715_v48 }
 0x317   : > { %1262 = vmatmul.mubr.msk.bf16.vlgmr.msra.gmra.mxu1 %vm726_vm9, %v717_v50 }
 0x318   : > { %1266 = vmatpush3.bf16.msra.mxu1 %v1312_v49  ;;  %1281 = vmatprep.mubr.msk.bf16.mxu1 %vm1333_vm0, %v1332_v16 }
 0x319   : > { %1267 = vmatprep.subr.bf16.mxu1 %v1332_v16 }
 0x31c   : > { %1268 = vmatpush3.bf16.msra.mxu1 %v1313_v51 }
 0x31d   : > { %1269 = vmatprep.subr.bf16.mxu1 %v1332_v16 }
 0x320   : > { %1270 = vmatpush3.bf16.msra.mxu1 %v1314_v52 }
 0x321   : > { %1271 = vmatprep.subr.bf16.mxu1 %v1332_v16 }
 0x324   : > { %1272 = vmatpush3.bf16.msra.mxu1 %v1315_v53 }
 0x325   : > { %1273 = vmatprep.subr.bf16.mxu1 %v1332_v16 }
 0x328   : > { %1274 = vmatpush3.bf16.msra.mxu1 %v1316_v54 }
 0x329   : > { %1275 = vmatprep.subr.bf16.mxu1 %v1332_v16 }
 0x32c   : > { %1276 = vmatpush3.bf16.msra.mxu1 %v1317_v55 }
 0x32d   : > { %1277 = vmatprep.subr.bf16.mxu1 %v1332_v16 }
 0x330   : > { %1278 = vmatpush3.bf16.msra.mxu1 %v1318_v56 }
 0x331   : > { %1279 = vmatprep.subr.bf16.mxu1 %v1332_v16 }
 0x334   : > { %1280 = vmatpush3.bf16.msra.mxu1 %v1319_v57 }
 0x3d7   : > { %v764_v58 = vpop.f32.mrf.mxu1 }
 0x3d9   : > { %v1263_v59 = vpop.f32.mrf.mxu1 }
 0x3db   : > { %v767_v60 = vpop.f32.mrf.mxu1 }
 0x3dc   : > { %v771_v61 = vpack.c.bf16 %v767_v60, %v764_v58 }
 0x3dd   : > { %v1264_v62 = vpop.f32.mrf.mxu1 }
 0x3de   : > { %1282 = vmatmul.mubr.bf16.vlgmr.msra.gmra.mxu1 %v771_v61 }
 0x49e   : > { %v870_v63 = vpop.f32.mrf.mxu1 }
 0x49f   : > { %v895_v2 = vmul.f32 %v870_v63, %v870_v63 }
 0x4a0   : > { %v1283_v0 = vpop.f32.mrf.mxu1 }
 0x4a2   : > { %v873_v1 = vpop.f32.mrf.mxu1 }
 0x4a3   : > { %v1087_v3 = vpack.c.bf16 %v873_v1, %v870_v63  ;;  %v887_v4 = vadd.f32 %v873_v1, %v870_v63  ;;  %v896_v5 = vmul.f32 %v873_v1, %v873_v1 }
 0x4a4   : > { %v1284_v6 = vpop.f32.mrf.mxu1 }
 0x4a5   : > { %1088 = vst [vmem:[%s325_s15] sm:$0xff] %v1087_v3   ;;  %v888_v7 = vrot.slane %v887_v4, 4  ;;  %v897_v8 = vadd.f32 %v896_v5, %v895_v2 }
 0x4a7   : > { %v889_v9 = vadd.f32 %v888_v7, %v887_v4  ;;  %v898_v10 = vrot.slane %v897_v8, 4 }
 0x4a9   : > { %v890_v11 = vrot.slane %v889_v9, 2  ;;  %v899_v12 = vadd.f32 %v898_v10, %v897_v8 }
 0x4ab   : > { %v891_v13 = vadd.f32 %v890_v11, %v889_v9  ;;  %v900_v14 = vrot.slane %v899_v12, 2 }
 0x4ad   : > { %v892_v15 = vrot.slane %v891_v13, 1  ;;  %v901_v16 = vadd.f32 %v900_v14, %v899_v12 }
 0x4af   : > { %v893_v17 = vadd.f32 %v892_v15, %v891_v13  ;;  %v902_v18 = vrot.slane %v901_v16, 1 }
 0x4b1   : > { %894 = vst [vmem:[%s329_s18] sm:$0x1] %v893_v17  ;;  %v903_v19 = vadd.f32 %v902_v18, %v901_v16 }
 0x4b3   : > { %904 = vst [vmem:[%s329_s18 + $0x1] sm:$0x1] %v903_v19 }
 0x4b4 PF: > { %s18_s24 = sadd.s32 1, %s1326_s24  }
 0x4b5   : > { %p15_p4 = scmp.ge.s32.totalorder %s18_s24, 4  }
 0x4b7   :  { %17 = sbr.rel (!%p15_p4) target bundleno = 1 (0x1), region = 94 }

</bundles_post_ra>
